<compile_context>
chip_gen: v5e
topology: v5e:2x2
jax: 0.10.0
libtpu: 0.0.40
codegen_flags: <defaults>
</compile_context>

<pallas_src>
import math
import numpy as np

import jax
import jax.numpy as jnp
from jax.experimental import pallas as pl
from jax.experimental.pallas import tpu as pltpu


def make_pe_table(d_model: int, max_len: int = 300) -> jnp.ndarray:
    """Reproduce the PyTorch buffer `pe` of shape (max_len, 1, d_model)."""
    position = np.arange(max_len, dtype=np.float32)[:, None]                  # (max_len, 1)
    div_term = np.exp(
        np.arange(0, d_model, 2, dtype=np.float32) * (-math.log(10000.0) / d_model)
    )
    pe = np.zeros((max_len, d_model), dtype=np.float32)
    pe[:, 0::2] = np.sin(position * div_term)
    if d_model % 2 != 0:
        pe[:, 1::2] = np.cos(position * div_term)[:, :-1]
    else:
        pe[:, 1::2] = np.cos(position * div_term)
    return jnp.asarray(pe)[:, None, :]                                        # (max_len, 1, d_model)


def _round_up(n: int, m: int) -> int:
    return ((n + m - 1) // m) * m


def _target_block_bytes() -> int:
    """Per-block byte target: ~2 MiB on v5e (16 MiB scoped-VMEM default),
    ~4 MiB on v6e/v7x (32 MiB scoped default)."""
    try:
        kind = jax.devices()[0].device_kind.lower()
    except Exception:
        return 2 << 20
    if "v5 lite" in kind or "v5lite" in kind or "v5e" in kind:
        return 2 << 20
    return 4 << 20


def _choose_block_s(S: int, padded_row_bytes: int, target_bytes: int) -> int:
    """Rows per block: multiple of 8 sublanes (or == S), sized to ~target_bytes
    of *padded* VMEM, and capped so the grid keeps >= ~8 steps (v7x: 2 TCs)."""
    rows = max(1, target_bytes // max(padded_row_bytes, 1))
    rows = max(8, rows - rows % 8)
    cap = max(8, _round_up(pl.cdiv(S, 8), 8))     # grid-length floor for v7x megacore
    rows = min(rows, cap)
    return min(S, rows)


def positional_encoding_forward(
    x: jnp.ndarray,
    pe: jnp.ndarray,
    *,
    dropout_p: float = 0.1,
    training: bool = False,
    seed: int = 0,
    block_s: int | None = None,
):
    """Pallas implementation of PositionalEncoding.forward.

    x  : (S, B, D);   pe : (max_len, 1, D), only the first S rows are used.
    """
    S, B, D = x.shape
    dtype = x.dtype
    itemsize = jnp.dtype(dtype).itemsize
    scale = float(math.sqrt(D))                      # Python float -> jaxpr literal

    apply_dropout = bool(training) and dropout_p > 0.0
    if apply_dropout and dropout_p >= 1.0:           # degenerate: everything dropped
        return jnp.zeros_like(x)

    # ---- prepare the (small) pe operand --------------------------------------
    pe_sl = pe[:S]                                   # (S, 1, D) float32
    if apply_dropout:
        keep_p = 1.0 - float(dropout_p)
        # Fold the 1/(1-p) dropout rescale into the constants -> no per-element mul.
        scale = scale / keep_p
        pe_sl = pe_sl / keep_p
        # Keep-mask threshold on raw uint32 bits; clamped so p ~ 1.0 can't overflow.
        threshold = min(int(dropout_p * (2.0 ** 32)), 2 ** 32 - 1)
    # pe travels in x's dtype (its HBM stream is only 1/B of x's).
    pe_sl = pe_sl.astype(dtype)

    # ---- layout: 3-D broadcast over batch (B>1), plain 2-D for B==1 ----------
    three_d = B > 1
    if three_d:
        # x block (block_s, B, D): contiguous HBM slab; pe block (block_s, 1, D)
        # broadcast over the batch (sublane) axis in-register.
        x_op, pe_op = x, pe_sl                                    # (S,B,D), (S,1,D)
        # NOTE: lane-dense stores need D % 128 == 0 (true for real d_model);
        # sublanes are dense when B % 8 == 0.  Unaligned shapes stay correct,
        # just with masked partial stores.
        padded_row_bytes = _round_up(B, 8) * _round_up(D, 128) * itemsize
        x_block, pe_block = (None, B, D), (None, 1, D)            # block_s filled below
    else:
        x_op, pe_op = x.reshape(S, D), pe_sl[:, 0, :]             # free row-major views
        padded_row_bytes = _round_up(D, 128) * itemsize
        x_block, pe_block = (None, D), (None, D)

    if block_s is None:
        block_s = _choose_block_s(S, padded_row_bytes, _target_block_bytes())
    block_s = min(int(block_s), S)
    grid = (pl.cdiv(S, block_s),)                    # ragged S -> masked boundary block

    x_block = (block_s,) + x_block[1:]
    pe_block = (block_s,) + pe_block[1:]
    if three_d:
        imap_e = lambda i: (i, 0, 0)                 # eval (no scalar prefetch)
        imap_t = lambda i, s: (i, 0, 0)              # training (seed ref trails)
    else:
        imap_e = lambda i: (i, 0)
        imap_t = lambda i, s: (i, 0)

    # ---- VMEM budget & compiler params ----------------------------------------
    x_blk_bytes = block_s * padded_row_bytes                         # padded x/out block
    pe_blk_bytes = block_s * (8 if three_d else 1) * _round_up(D, 128) * itemsize
    vmem_limit = int(1.3 * (2 * 2 * x_blk_bytes + 2 * pe_blk_bytes)) + (1 << 20)
    vmem_limit = max(8 << 20, min(vmem_limit, 30 << 20))
    cparams = pltpu.CompilerParams(
        dimension_semantics=("parallel",),
        vmem_limit_bytes=vmem_limit,
    )
    cost = pl.CostEstimate(
        flops=2 * x.size,
        transcendentals=0,
        bytes_accessed=int(2 * x.size * itemsize + pe_op.size * itemsize),
    )

    def _compute(x_ref, pe_ref):
        # Single explicit up-cast; compute in f32 (v5e has no bf16 VPU, and this
        # matches PyTorch's f32 pe promotion).  Down-cast happens once at the store.
        x32 = x_ref[...].astype(jnp.float32)
        pe32 = pe_ref[...].astype(jnp.float32)       # (block_s, 1, D) broadcasts over B
        return x32 * scale + pe32

    out_shape = jax.ShapeDtypeStruct(x_op.shape, dtype)

    if not apply_dropout:
        # Eval / inference path: no seed operand, no SMEM prefetch.
        def kernel(x_ref, pe_ref, o_ref):
            o_ref[...] = _compute(x_ref, pe_ref).astype(o_ref.dtype)

        out = pl.pallas_call(
            kernel,
            out_shape=out_shape,
            grid=grid,
            in_specs=[pl.BlockSpec(x_block, imap_e),
                      pl.BlockSpec(pe_block, imap_e)],
            out_specs=pl.BlockSpec(x_block, imap_e),
            compiler_params=cparams,
            cost_estimate=cost,
            input_output_aliases={0: 0},             # reuse x's HBM buffer when donated
        )(x_op, pe_op)
    else:
        # Training path: hardware-PRNG dropout, seed via scalar prefetch.
        # TODO(synk): not exercised by the self-check below (stochastic); the TPU
        # PRNG matches torch dropout only in distribution, not bit-for-bit, and the
        # caller must vary `seed` across steps to avoid reusing the same mask.
        def kernel(seed_ref, x_ref, pe_ref, o_ref):
            y = _compute(x_ref, pe_ref)
            pltpu.prng_seed(seed_ref[0] + pl.program_id(0))
            bits = pltpu.prng_random_bits(y.shape)
            if bits.dtype != jnp.uint32:             # normally already uint32
                bits = pltpu.bitcast(bits, jnp.uint32)
            keep = bits >= jnp.uint32(threshold)     # P(keep) = 1 - p
            o_ref[...] = jnp.where(keep, y, 0.0).astype(o_ref.dtype)

        out = pl.pallas_call(
            kernel,
            out_shape=out_shape,
            grid_spec=pltpu.PrefetchScalarGridSpec(
                num_scalar_prefetch=1,
                grid=grid,
                in_specs=[pl.BlockSpec(x_block, imap_t),
                          pl.BlockSpec(pe_block, imap_t)],
                out_specs=pl.BlockSpec(x_block, imap_t),
            ),
            compiler_params=cparams,
            cost_estimate=cost,
            # TODO(synk): x<->out aliasing intentionally omitted here; the operand
            # index would have to account for the scalar-prefetch seed and differs
            # across JAX versions (review correctness concern).
        )(jnp.asarray([seed], dtype=jnp.int32), x_op, pe_op)

    return out.reshape(S, B, D)


def positional_encoding_ref(x, pe):
    """Pure-JAX reference (eval mode: dropout is identity)."""
    S, _, D = x.shape
    return x * math.sqrt(D) + pe[:S]


if __name__ == "__main__":
    key = jax.random.PRNGKey(0)
    k1, k2 = jax.random.split(key)

    # Case 1: small shapes consistent with the module: seq=8, batch=2, d_model=32.
    S, B, D = 8, 2, 32
    x = jax.random.normal(k1, (S, B, D), dtype=jnp.float32)
    pe = make_pe_table(D, max_len=300)
    out = positional_encoding_forward(x, pe, dropout_p=0.1, training=False)
    out = jax.block_until_ready(out)
    ref = positional_encoding_ref(x, pe)
    np.testing.assert_allclose(np.asarray(out), np.asarray(ref), rtol=1e-6, atol=1e-6)

    # Case 2: lane/sublane-aligned shape (d_model % 128 == 0, batch % 8 == 0)
    # exercising the dense 3-D broadcast layout with a multi-step grid.
    S2, B2, D2 = 64, 8, 128
    x2 = jax.random.normal(k2, (S2, B2, D2), dtype=jnp.float32)
    pe2 = make_pe_table(D2, max_len=300)
    out2 = positional_encoding_forward(x2, pe2, dropout_p=0.1, training=False)
    out2 = jax.block_until_ready(out2)
    ref2 = positional_encoding_ref(x2, pe2)
    np.testing.assert_allclose(np.asarray(out2), np.asarray(ref2), rtol=1e-5, atol=1e-5)

    print("KERNEL_OK")
</pallas_src>

<mosaic_0001>
module attributes {stable_mosaic.version = 11 : i64} {
  func.func @kernel(%arg0: i32, %arg1: memref<8x2x32xf32, #tpu.memory_space<vmem>>, %arg2: memref<8x1x32xf32, #tpu.memory_space<vmem>>, %arg3: memref<8x2x32xf32, #tpu.memory_space<vmem>>) attributes {dimension_semantics = [#tpu.dimension_semantics<parallel>], iteration_bounds = array<i64: 1>, scalar_prefetch = 0 : i64, scratch_operands = 0 : i64, tpu.core_type = #tpu.core_type<tc>, window_params = [{transform_indices = @transform_0, window_bounds = array<i64: 8, 2, 32>}, {transform_indices = @transform_1, window_bounds = array<i64: 8, 1, 32>}, {transform_indices = @transform_2, window_bounds = array<i64: 8, 2, 32>}]} {
    %c0 = arith.constant 0 : index
    %c0_0 = arith.constant 0 : index
    %c0_1 = arith.constant 0 : index
    %0 = vector.load %arg1[%c0, %c0_0, %c0_1] : memref<8x2x32xf32, #tpu.memory_space<vmem>>, vector<8x2x32xf32>
    %c0_2 = arith.constant 0 : index
    %c0_3 = arith.constant 0 : index
    %c0_4 = arith.constant 0 : index
    %1 = vector.load %arg2[%c0_2, %c0_3, %c0_4] : memref<8x1x32xf32, #tpu.memory_space<vmem>>, vector<8x1x32xf32>
    %cst = arith.constant 5.65685415 : f32
    %2 = vector.broadcast %cst : f32 to vector<8x2x32xf32>
    %3 = arith.mulf %0, %2 : vector<8x2x32xf32>
    %4 = vector.broadcast %1 : vector<8x1x32xf32> to vector<8x2x32xf32>
    %5 = arith.addf %3, %4 : vector<8x2x32xf32>
    %c0_5 = arith.constant 0 : index
    %c0_6 = arith.constant 0 : index
    %c0_7 = arith.constant 0 : index
    %6 = vector.load %arg3[%c0_5, %c0_6, %c0_7] : memref<8x2x32xf32, #tpu.memory_space<vmem>>, vector<8x2x32xf32>
    tpu.vector_store %arg3[%c0_5, %c0_6, %c0_7], %5 {strides = array<i32>} : memref<8x2x32xf32, #tpu.memory_space<vmem>>, vector<8x2x32xf32>,
    return
  }
  func.func @transform_0(%arg0: i32) -> (i32, i32, i32) {
    %c0_i32 = arith.constant 0 : i32
    %c0_i32_0 = arith.constant 0 : i32
    %c0_i32_1 = arith.constant 0 : i32
    return %arg0, %c0_i32, %c0_i32_0 : i32, i32, i32
  }
  func.func @transform_1(%arg0: i32) -> (i32, i32, i32) {
    %c0_i32 = arith.constant 0 : i32
    %c0_i32_0 = arith.constant 0 : i32
    %c0_i32_1 = arith.constant 0 : i32
    return %arg0, %c0_i32, %c0_i32_0 : i32, i32, i32
  }
  func.func @transform_2(%arg0: i32) -> (i32, i32, i32) {
    %c0_i32 = arith.constant 0 : i32
    %c0_i32_0 = arith.constant 0 : i32
    %c0_i32_1 = arith.constant 0 : i32
    return %arg0, %c0_i32, %c0_i32_0 : i32, i32, i32
  }
}

</mosaic_0001>

<bundles_post_ra>
// kernel: tpu_custom_call.1
= control target key start
LH: loop header
LB: loop body
LE: loop exit
PB: predicated region body
PF: predicated region fallthrough
CT: control target
= control target key end

     0   :  { %7 = vsyncpa [#allocation3], 0  ;;  %s246_s0 = inlined_call_operand.hbm [shape: f32[8,2,32], index: 0, kind: input, shape index: {}, may-alias: {0,2}]   ;;  %s247_s1 = inlined_call_operand.vmem [shape: f32[8,1,32], index: 1, kind: input, shape index: {}]   ;;  %s248_s2 = inlined_call_operand.hbm [shape: f32[8,2,32], index: 2, kind: output, shape index: {}, may-alias: {0,2}]  }
   0x1   :  { %8 = vsyncpa [#allocation4], 0  ;;  %s13_s11 = sshll.u32 %s246_s0, 4  ;;  %s176_s12 = smov [#allocation2]   ;;  %s14_s11 = int_to_ptr.hbm [resolvable:$true] %s13_s11 }
   0x2   :  { %s15_s13 = sshll.u32 %s176_s12, 4  ;;  %s177_s14 = smov 32   ;;  %s16_s13 = int_to_ptr.vmem [resolvable:$true] %s15_s13 }
   0x3   :  { %s178_s15 = smov 2  }
   0x4   :  { %21 = dma.hbm_to_vmem [thread:$0]  %s14_s11, 256, %s16_s13, [#allocation3], %s177_s14, %s177_s14, %s178_s15  }
   0x5   :  { %172 = dma.done.wait [#allocation3], 256  }
   0x6   :  { %173 = vsyncadd [#allocation3], 4294967040  ;;  %vm84_vm0 = vcmask 254976   ;;  %s179_s16 = smov [#allocation5]   ;;  %s99_s0 = sshll.u32 %s248_s2, 4  ;;  %s100_s0 = int_to_ptr.hbm [resolvable:$true] %s99_s0 }
   0x7   :  { %s201_s17 = sshll.u32 %s179_s16, 4  ;;  %v28_v0 = vld [vmem:[#allocation2] sm:$0x3]  ;;  %v29_v3 = vld [vmem:[#allocation2 + $0x2] sm:$0x3]  ;;  %s98_s17 = int_to_ptr.vmem [resolvable:$true] %s201_s17 }
   0x8   :  { %v116_v1 = vld [vmem:[%s247_s1] ss:$0 sm:$0xff]  ;;  %v44_v2 = vmul.f32 5.656854, %v28_v0  ;;  %v45_v4 = vmul.f32 5.656854, %v29_v3 }
   0x9   :  { %v117_v5 = vld [vmem:[%s247_s1 + $0x1] ss:$0 sm:$0xff]  ;;  %v30_v6 = vld [vmem:[#allocation2 + $0x4] sm:$0x3]  ;;  %v118_v9 = vld [vmem:[%s247_s1 + $0x2] ss:$0 sm:$0xff] }
   0xa   :  { %v76_v7 = vadd.f32 %v116_v1, %v44_v2  ;;  %v46_v8 = vmul.f32 5.656854, %v30_v6  ;;  %v77_v10 = vadd.f32 %v117_v5, %v45_v4  ;;  %v31_v11 = vld [vmem:[#allocation2 + $0x6] sm:$0x3]  ;;  %v119_v12 = vld [vmem:[%s247_s1 + $0x3] ss:$0 sm:$0xff] }
   0xb   :  { %v47_v14 = vmul.f32 5.656854, %v31_v11  ;;  %v32_v15 = vld [vmem:[#allocation2 + $0x8] sm:$0x3]  ;;  %v120_v18 = vld [vmem:[%s247_s1 + $0x4] ss:$0 sm:$0xff] }
   0xc   :  { %85 = vst.msk [vmem:[#allocation5] sm:$0x3] %vm84_vm0, %v76_v7  ;;  %v78_v13 = vadd.f32 %v118_v9, %v46_v8  ;;  %v48_v16 = vmul.f32 5.656854, %v32_v15  ;;  %v33_v19 = vld [vmem:[#allocation2 + $0xa] sm:$0x3] }
   0xd   :  { %86 = vst.msk [vmem:[#allocation5 + $0x2] sm:$0x3] %vm84_vm0, %v77_v10  ;;  %v79_v17 = vadd.f32 %v119_v12, %v47_v14  ;;  %v49_v20 = vmul.f32 5.656854, %v33_v19  ;;  %v121_v21 = vld [vmem:[%s247_s1 + $0x5] ss:$0 sm:$0xff] }
   0xe   :  { %87 = vst.msk [vmem:[#allocation5 + $0x4] sm:$0x3] %vm84_vm0, %v78_v13  ;;  %v80_v22 = vadd.f32 %v120_v18, %v48_v16  ;;  %v34_v23 = vld [vmem:[#allocation2 + $0xc] sm:$0x3]  ;;  %v122_v26 = vld [vmem:[%s247_s1 + $0x6] ss:$0 sm:$0xff] }
   0xf   :  { %88 = vst.msk [vmem:[#allocation5 + $0x6] sm:$0x3] %vm84_vm0, %v79_v17  ;;  %v81_v24 = vadd.f32 %v121_v21, %v49_v20  ;;  %v50_v25 = vmul.f32 5.656854, %v34_v23  ;;  %v35_v27 = vld [vmem:[#allocation2 + $0xe] sm:$0x3] }
  0x10   :  { %89 = vst.msk [vmem:[#allocation5 + $0x8] sm:$0x3] %vm84_vm0, %v80_v22  ;;  %v51_v28 = vmul.f32 5.656854, %v35_v27  ;;  %v123_v30 = vld [vmem:[%s247_s1 + $0x7] ss:$0 sm:$0xff] }
  0x11   :  { %90 = vst.msk [vmem:[#allocation5 + $0xa] sm:$0x3] %vm84_vm0, %v81_v24  ;;  %v82_v29 = vadd.f32 %v122_v26, %v50_v25 }
  0x12   :  { %v83_v31 = vadd.f32 %v123_v30, %v51_v28 }
  0x13   :  { %91 = vst.msk [vmem:[#allocation5 + $0xc] sm:$0x3] %vm84_vm0, %v82_v29 }
  0x14   :  { %92 = vst.msk [vmem:[#allocation5 + $0xe] sm:$0x3] %vm84_vm0, %v83_v31 }
  0x15   :  { %105 = dma.vmem_to_hbm [thread:$0]  %s98_s17, 256, %s100_s0, [#allocation4], %s177_s14, %s177_s14, %s178_s15  }
  0x16   :  { %174 = dma.done.wait [#allocation4], 256  }
  0x17   :  { %175 = vsyncadd [#allocation4], 4294967040 }
  0x18   :  { %110 = vsyncpa [#allocation3], 1 }
  0x19   :  { %111 = vsyncpa [#allocation4], 1 }

</bundles_post_ra>
